<compile_context>
chip_gen: v5e
topology: v5e:2x2
jax: 0.10.0
libtpu: 0.0.40
codegen_flags: <defaults>
</compile_context>

<pallas_src>
import functools

import jax
import jax.numpy as jnp
from jax.experimental import pallas as pl
from jax.experimental.pallas import tpu as pltpu

BN_EPS = 1e-5
LRELU_SLOPE = 0.01  # PyTorch nn.LeakyReLU default negative_slope


def _round_up(n, m):
    return (n + m - 1) // m * m


def _dnn_kernel(x_ref,
                w1, b1, w2, b2, w3, b3, w4, b4, w5r, b5,
                o_ref, *, compute_dtype):
    """Whole (BN-folded) MLP chain for one batch tile; params resident in VMEM."""

    def layer(h, w, b):
        # MXU matmul in compute_dtype (bf16 by default), f32 accumulation.
        y = jnp.dot(h.astype(compute_dtype), w[...],
                    preferred_element_type=jnp.float32) + b[...]
        # LeakyReLU in f32 on the VPU.
        return jnp.where(y > 0, y, LRELU_SLOPE * y)

    h = x_ref[...]                      # (tile, F) f32
    h = layer(h, w1, b1)                # Dropout(0.4) == identity (eval)
    h = layer(h, w2, b2)                # Dropout(0.3) == identity (eval)
    h = layer(h, w3, b3)                # Dropout(0.2) == identity (eval)
    h = layer(h, w4, b4)
    # Final Linear(32, 1): an N=1 matmul wastes an MXU push; do it as a VPU
    # multiply + lane (XLU) reduction instead.
    o_ref[...] = jnp.sum(h * w5r[...], axis=-1, keepdims=True) + b5[...]


def fold_params(params, *, compute_dtype=jnp.bfloat16):
    """One-time preprocessing: fold eval-mode BatchNorm1d into the Linear W/b.

    Input: 22 arrays from init_params (W pre-transposed to (in, out)).
    Output: 10 arrays [w1,b1, w2,b2, w3,b3, w4,b4, w5_row(1,32), b5(1,1)].
    Hidden-layer weights are cast to compute_dtype (MXU operand dtype); biases
    and the tiny final layer stay f32.
    """
    (w1, b1, g1, be1, m1, v1,
     w2, b2, g2, be2, m2, v2,
     w3, b3, g3, be3, m3, v3,
     w4, b4, g4, be4, m4, v4,
     w5, b5) = params
    folded = []
    for w, b, g, be, m, v in ((w1, b1, g1, be1, m1, v1),
                              (w2, b2, g2, be2, m2, v2),
                              (w3, b3, g3, be3, m3, v3),
                              (w4, b4, g4, be4, m4, v4)):
        scale = g * jax.lax.rsqrt(v + BN_EPS)                    # (1, out) f32
        folded.append((w * scale).astype(compute_dtype))         # (in, out)
        folded.append(((b - m) * scale + be).astype(jnp.float32))  # (1, out)
    folded.append(jnp.asarray(w5, jnp.float32).T.reshape(1, -1))   # (1, 32)
    folded.append(jnp.asarray(b5, jnp.float32).reshape(1, 1))      # (1, 1)
    return folded


def dense_nn_forward(x, folded_params, *, batch_tile=256,
                     compute_dtype=jnp.bfloat16):
    """x: (B, input_size) float32.  folded_params: output of fold_params()."""
    B, F = x.shape
    # Large, MXU-friendly batch tile, but never bigger than the padded batch;
    # always a multiple of 8 (f32 sublane tiling of the x / output blocks).
    tile = max(8, min(_round_up(batch_tile, 8), _round_up(B, 8)))
    Bp = _round_up(B, tile)
    if Bp != B:
        x = jnp.pad(x, ((0, Bp - B), (0, 0)))
    grid = (Bp // tile,)

    def resident(p):
        # Whole-array block with a constant index map: fetched once, stays
        # resident in VMEM across the (parallel) batch grid.
        return pl.BlockSpec(p.shape, lambda i: (0, 0))

    in_specs = [pl.BlockSpec((tile, F), lambda i: (i, 0))]
    in_specs += [resident(p) for p in folded_params]
    out_specs = pl.BlockSpec((tile, 1), lambda i: (i, 0))

    out = pl.pallas_call(
        functools.partial(_dnn_kernel, compute_dtype=compute_dtype),
        out_shape=jax.ShapeDtypeStruct((Bp, 1), jnp.float32),
        grid_spec=pltpu.PrefetchScalarGridSpec(
            num_scalar_prefetch=0,
            grid=grid,
            in_specs=in_specs,
            out_specs=out_specs,
        ),
        compiler_params=pltpu.CompilerParams(
            dimension_semantics=("parallel",)),
    )(x, *folded_params)
    return out[:B]


def init_params(key, input_size):
    """Deterministic synthetic init matching the PyTorch module's shapes.

    Linear(i, o): W (o, i) uniform(-1/sqrt(i), 1/sqrt(i)), b (o,) same range.
    BatchNorm1d(o): gamma, beta, running_mean, running_var.
    Weights are returned pre-transposed to (in, out); 1-D params as (1, out).
    """
    dims = [input_size, 256, 128, 64, 32, 1]
    params = []
    for li in range(5):
        fin, fout = dims[li], dims[li + 1]
        key, kw, kb, kg, kbe, km, kv = jax.random.split(key, 7)
        bound = 1.0 / jnp.sqrt(jnp.float32(fin))
        w = jax.random.uniform(kw, (fin, fout), jnp.float32, -bound, bound)
        b = jax.random.uniform(kb, (1, fout), jnp.float32, -bound, bound)
        params += [w, b]
        if li < 4:  # hidden layers have BatchNorm1d
            gamma = 1.0 + 0.1 * jax.random.normal(kg, (1, fout), jnp.float32)
            beta = 0.1 * jax.random.normal(kbe, (1, fout), jnp.float32)
            mean = 0.1 * jax.random.normal(km, (1, fout), jnp.float32)
            var = 1.0 + 0.1 * jax.random.uniform(kv, (1, fout), jnp.float32)
            params += [gamma, beta, mean, var]
    return params


def reference_forward(x, params):
    """Pure-JAX f32 reference of the same eval-mode forward (unfused BN)."""
    (w1, b1, g1, be1, m1, v1,
     w2, b2, g2, be2, m2, v2,
     w3, b3, g3, be3, m3, v3,
     w4, b4, g4, be4, m4, v4,
     w5, b5) = params

    def block(h, w, b, g, be, m, v):
        y = h @ w + b
        y = (y - m) * g / jnp.sqrt(v + BN_EPS) + be
        return jnp.where(y > 0, y, LRELU_SLOPE * y)

    h = block(x, w1, b1, g1, be1, m1, v1)
    h = block(h, w2, b2, g2, be2, m2, v2)
    h = block(h, w3, b3, g3, be3, m3, v3)
    h = block(h, w4, b4, g4, be4, m4, v4)
    return h @ w5 + b5


if __name__ == "__main__":
    INPUT_SIZE = 32
    BATCH = 8

    key = jax.random.PRNGKey(0)
    kx, kp = jax.random.split(key)
    x = jax.random.normal(kx, (BATCH, INPUT_SIZE), jnp.float32)
    params = init_params(kp, INPUT_SIZE)
    ref = reference_forward(x, params)

    # 1) f32 matmul path: tight check against the pure-JAX reference.
    p_f32 = fold_params(params, compute_dtype=jnp.float32)
    fwd_f32 = jax.jit(functools.partial(dense_nn_forward,
                                        compute_dtype=jnp.float32))
    out_f32 = jax.block_until_ready(fwd_f32(x, p_f32))
    assert out_f32.shape == (BATCH, 1)
    assert jnp.allclose(out_f32, ref, atol=1e-4, rtol=1e-4), (out_f32, ref)

    # 2) Default bf16-matmul perf path (f32 accumulation): loose tolerance.
    p_bf16 = fold_params(params, compute_dtype=jnp.bfloat16)
    fwd_bf16 = jax.jit(dense_nn_forward)
    out_bf16 = jax.block_until_ready(fwd_bf16(x, p_bf16))
    assert out_bf16.shape == (BATCH, 1)
    assert jnp.allclose(out_bf16, ref, atol=3e-2, rtol=3e-2), (out_bf16, ref)

    # 3) Batch not a multiple of the tile: exercises padding + multi-step grid.
    x2 = jax.random.normal(jax.random.PRNGKey(1), (20, INPUT_SIZE), jnp.float32)
    fwd_pad = jax.jit(functools.partial(dense_nn_forward, batch_tile=8,
                                        compute_dtype=jnp.float32))
    out2 = jax.block_until_ready(fwd_pad(x2, p_f32))
    ref2 = reference_forward(x2, params)
    assert out2.shape == (20, 1)
    assert jnp.allclose(out2, ref2, atol=1e-4, rtol=1e-4), (out2, ref2)

    print("KERNEL_OK")
</pallas_src>

<mosaic_0001>
module attributes {stable_mosaic.version = 11 : i64} {
  func.func @_dnn_kernel(%arg0: i32, %arg1: memref<8x32xf32, #tpu.memory_space<vmem>>, %arg2: memref<32x256xf32, #tpu.memory_space<vmem>>, %arg3: memref<1x256xf32, #tpu.memory_space<vmem>>, %arg4: memref<256x128xf32, #tpu.memory_space<vmem>>, %arg5: memref<1x128xf32, #tpu.memory_space<vmem>>, %arg6: memref<128x64xf32, #tpu.memory_space<vmem>>, %arg7: memref<1x64xf32, #tpu.memory_space<vmem>>, %arg8: memref<64x32xf32, #tpu.memory_space<vmem>>, %arg9: memref<1x32xf32, #tpu.memory_space<vmem>>, %arg10: memref<1x32xf32, #tpu.memory_space<vmem>>, %arg11: memref<1x1xf32, #tpu.memory_space<vmem>>, %arg12: memref<8x1xf32, #tpu.memory_space<vmem>>) attributes {dimension_semantics = [#tpu.dimension_semantics<parallel>], iteration_bounds = array<i64: 1>, scalar_prefetch = 0 : i64, scratch_operands = 0 : i64, tpu.core_type = #tpu.core_type<tc>, window_params = [{transform_indices = @transform_0, window_bounds = array<i64: 8, 32>}, {pipeline_mode = #tpu.pipeline_mode<synchronous>, transform_indices = @transform_1, window_bounds = array<i64: 32, 256>}, {pipeline_mode = #tpu.pipeline_mode<synchronous>, transform_indices = @transform_2, window_bounds = array<i64: 1, 256>}, {pipeline_mode = #tpu.pipeline_mode<synchronous>, transform_indices = @transform_3, window_bounds = array<i64: 256, 128>}, {pipeline_mode = #tpu.pipeline_mode<synchronous>, transform_indices = @transform_4, window_bounds = array<i64: 1, 128>}, {pipeline_mode = #tpu.pipeline_mode<synchronous>, transform_indices = @transform_5, window_bounds = array<i64: 128, 64>}, {pipeline_mode = #tpu.pipeline_mode<synchronous>, transform_indices = @transform_6, window_bounds = array<i64: 1, 64>}, {pipeline_mode = #tpu.pipeline_mode<synchronous>, transform_indices = @transform_7, window_bounds = array<i64: 64, 32>}, {pipeline_mode = #tpu.pipeline_mode<synchronous>, transform_indices = @transform_8, window_bounds = array<i64: 1, 32>}, {pipeline_mode = #tpu.pipeline_mode<synchronous>, transform_indices = @transform_9, window_bounds = array<i64: 1, 32>}, {pipeline_mode = #tpu.pipeline_mode<synchronous>, transform_indices = @transform_10, window_bounds = array<i64: 1, 1>}, {transform_indices = @transform_11, window_bounds = array<i64: 8, 1>}]} {
    %c0 = arith.constant 0 : index
    %c0_0 = arith.constant 0 : index
    %0 = vector.load %arg1[%c0, %c0_0] : memref<8x32xf32, #tpu.memory_space<vmem>>, vector<8x32xf32>
    %c0_1 = arith.constant 0 : index
    %c0_2 = arith.constant 0 : index
    %1 = vector.load %arg2[%c0_1, %c0_2] : memref<32x256xf32, #tpu.memory_space<vmem>>, vector<32x256xf32>
    %cst = arith.constant dense<0.000000e+00> : vector<8x256xf32>
    %2 = tpu.matmul %0, %1, %cst {dimension_numbers = #tpu.dot_dimension_numbers<[1], [0], [0], [1], [0, 0, 1, 1], [], []>} : vector<8x32xf32>, vector<32x256xf32>, vector<8x256xf32> -> vector<8x256xf32>
    %c0_3 = arith.constant 0 : index
    %c0_4 = arith.constant 0 : index
    %3 = vector.load %arg3[%c0_3, %c0_4] : memref<1x256xf32, #tpu.memory_space<vmem>>, vector<1x256xf32>
    %4 = vector.broadcast %3 : vector<1x256xf32> to vector<8x256xf32>
    %5 = arith.addf %2, %4 : vector<8x256xf32>
    %cst_5 = arith.constant 0.000000e+00 : f32
    %6 = vector.broadcast %cst_5 : f32 to vector<8x256xf32>
    %7 = arith.cmpf ogt, %5, %6 : vector<8x256xf32>
    %cst_6 = arith.constant 0.00999999977 : f32
    %8 = vector.broadcast %cst_6 : f32 to vector<8x256xf32>
    %9 = arith.mulf %8, %5 : vector<8x256xf32>
    %10 = arith.select %7, %5, %9 : vector<8x256xi1>, vector<8x256xf32>
    %c0_7 = arith.constant 0 : index
    %c0_8 = arith.constant 0 : index
    %11 = vector.load %arg4[%c0_7, %c0_8] : memref<256x128xf32, #tpu.memory_space<vmem>>, vector<256x128xf32>
    %cst_9 = arith.constant dense<0.000000e+00> : vector<8x128xf32>
    %12 = tpu.matmul %10, %11, %cst_9 {dimension_numbers = #tpu.dot_dimension_numbers<[1], [0], [0], [1], [0, 0, 1, 1], [], []>} : vector<8x256xf32>, vector<256x128xf32>, vector<8x128xf32> -> vector<8x128xf32>
    %c0_10 = arith.constant 0 : index
    %c0_11 = arith.constant 0 : index
    %13 = vector.load %arg5[%c0_10, %c0_11] : memref<1x128xf32, #tpu.memory_space<vmem>>, vector<1x128xf32>
    %14 = vector.broadcast %13 : vector<1x128xf32> to vector<8x128xf32>
    %15 = arith.addf %12, %14 : vector<8x128xf32>
    %cst_12 = arith.constant 0.000000e+00 : f32
    %16 = vector.broadcast %cst_12 : f32 to vector<8x128xf32>
    %17 = arith.cmpf ogt, %15, %16 : vector<8x128xf32>
    %cst_13 = arith.constant 0.00999999977 : f32
    %18 = vector.broadcast %cst_13 : f32 to vector<8x128xf32>
    %19 = arith.mulf %18, %15 : vector<8x128xf32>
    %20 = arith.select %17, %15, %19 : vector<8x128xi1>, vector<8x128xf32>
    %c0_14 = arith.constant 0 : index
    %c0_15 = arith.constant 0 : index
    %21 = vector.load %arg6[%c0_14, %c0_15] : memref<128x64xf32, #tpu.memory_space<vmem>>, vector<128x64xf32>
    %cst_16 = arith.constant dense<0.000000e+00> : vector<8x64xf32>
    %22 = tpu.matmul %20, %21, %cst_16 {dimension_numbers = #tpu.dot_dimension_numbers<[1], [0], [0], [1], [0, 0, 1, 1], [], []>} : vector<8x128xf32>, vector<128x64xf32>, vector<8x64xf32> -> vector<8x64xf32>
    %c0_17 = arith.constant 0 : index
    %c0_18 = arith.constant 0 : index
    %23 = vector.load %arg7[%c0_17, %c0_18] : memref<1x64xf32, #tpu.memory_space<vmem>>, vector<1x64xf32>
    %24 = vector.broadcast %23 : vector<1x64xf32> to vector<8x64xf32>
    %25 = arith.addf %22, %24 : vector<8x64xf32>
    %cst_19 = arith.constant 0.000000e+00 : f32
    %26 = vector.broadcast %cst_19 : f32 to vector<8x64xf32>
    %27 = arith.cmpf ogt, %25, %26 : vector<8x64xf32>
    %cst_20 = arith.constant 0.00999999977 : f32
    %28 = vector.broadcast %cst_20 : f32 to vector<8x64xf32>
    %29 = arith.mulf %28, %25 : vector<8x64xf32>
    %30 = arith.select %27, %25, %29 : vector<8x64xi1>, vector<8x64xf32>
    %c0_21 = arith.constant 0 : index
    %c0_22 = arith.constant 0 : index
    %31 = vector.load %arg8[%c0_21, %c0_22] : memref<64x32xf32, #tpu.memory_space<vmem>>, vector<64x32xf32>
    %cst_23 = arith.constant dense<0.000000e+00> : vector<8x32xf32>
    %32 = tpu.matmul %30, %31, %cst_23 {dimension_numbers = #tpu.dot_dimension_numbers<[1], [0], [0], [1], [0, 0, 1, 1], [], []>} : vector<8x64xf32>, vector<64x32xf32>, vector<8x32xf32> -> vector<8x32xf32>
    %c0_24 = arith.constant 0 : index
    %c0_25 = arith.constant 0 : index
    %33 = vector.load %arg9[%c0_24, %c0_25] : memref<1x32xf32, #tpu.memory_space<vmem>>, vector<1x32xf32>
    %34 = vector.broadcast %33 : vector<1x32xf32> to vector<8x32xf32>
    %35 = arith.addf %32, %34 : vector<8x32xf32>
    %cst_26 = arith.constant 0.000000e+00 : f32
    %36 = vector.broadcast %cst_26 : f32 to vector<8x32xf32>
    %37 = arith.cmpf ogt, %35, %36 : vector<8x32xf32>
    %cst_27 = arith.constant 0.00999999977 : f32
    %38 = vector.broadcast %cst_27 : f32 to vector<8x32xf32>
    %39 = arith.mulf %38, %35 : vector<8x32xf32>
    %40 = arith.select %37, %35, %39 : vector<8x32xi1>, vector<8x32xf32>
    %c0_28 = arith.constant 0 : index
    %c0_29 = arith.constant 0 : index
    %41 = vector.load %arg10[%c0_28, %c0_29] : memref<1x32xf32, #tpu.memory_space<vmem>>, vector<1x32xf32>
    %42 = vector.broadcast %41 : vector<1x32xf32> to vector<8x32xf32>
    %43 = arith.mulf %40, %42 : vector<8x32xf32>
    %cst_30 = arith.constant dense<0.000000e+00> : vector<8xf32>
    %44 = vector.multi_reduction <add>, %43, %cst_30 [1] : vector<8x32xf32> to vector<8xf32>
    %45 = vector.shape_cast %44 : vector<8xf32> to vector<8x1xf32>
    %c0_31 = arith.constant 0 : index
    %c0_32 = arith.constant 0 : index
    %46 = vector.load %arg11[%c0_31, %c0_32] : memref<1x1xf32, #tpu.memory_space<vmem>>, vector<1x1xf32>
    %47 = vector.broadcast %46 : vector<1x1xf32> to vector<8x1xf32>
    %48 = arith.addf %45, %47 : vector<8x1xf32>
    %c0_33 = arith.constant 0 : index
    %c0_34 = arith.constant 0 : index
    %49 = vector.load %arg12[%c0_33, %c0_34] : memref<8x1xf32, #tpu.memory_space<vmem>>, vector<8x1xf32>
    tpu.vector_store %arg12[%c0_33, %c0_34], %48 {strides = array<i32>} : memref<8x1xf32, #tpu.memory_space<vmem>>, vector<8x1xf32>,
    return
  }
  func.func @transform_0(%arg0: i32) -> (i32, i32) {
    %c0_i32 = arith.constant 0 : i32
    %c0_i32_0 = arith.constant 0 : i32
    return %arg0, %c0_i32 : i32, i32
  }
  func.func @transform_1(%arg0: i32) -> (i32, i32) {
    %c0_i32 = arith.constant 0 : i32
    %c0_i32_0 = arith.constant 0 : i32
    %c0_i32_1 = arith.constant 0 : i32
    return %c0_i32, %c0_i32_0 : i32, i32
  }
  func.func @transform_2(%arg0: i32) -> (i32, i32) {
    %c0_i32 = arith.constant 0 : i32
    %c0_i32_0 = arith.constant 0 : i32
    %c0_i32_1 = arith.constant 0 : i32
    return %c0_i32, %c0_i32_0 : i32, i32
  }
  func.func @transform_3(%arg0: i32) -> (i32, i32) {
    %c0_i32 = arith.constant 0 : i32
    %c0_i32_0 = arith.constant 0 : i32
    %c0_i32_1 = arith.constant 0 : i32
    return %c0_i32, %c0_i32_0 : i32, i32
  }
  func.func @transform_4(%arg0: i32) -> (i32, i32) {
    %c0_i32 = arith.constant 0 : i32
    %c0_i32_0 = arith.constant 0 : i32
    %c0_i32_1 = arith.constant 0 : i32
    return %c0_i32, %c0_i32_0 : i32, i32
  }
  func.func @transform_5(%arg0: i32) -> (i32, i32) {
    %c0_i32 = arith.constant 0 : i32
    %c0_i32_0 = arith.constant 0 : i32
    %c0_i32_1 = arith.constant 0 : i32
    return %c0_i32, %c0_i32_0 : i32, i32
  }
  func.func @transform_6(%arg0: i32) -> (i32, i32) {
    %c0_i32 = arith.constant 0 : i32
    %c0_i32_0 = arith.constant 0 : i32
    %c0_i32_1 = arith.constant 0 : i32
    return %c0_i32, %c0_i32_0 : i32, i32
  }
  func.func @transform_7(%arg0: i32) -> (i32, i32) {
    %c0_i32 = arith.constant 0 : i32
    %c0_i32_0 = arith.constant 0 : i32
    %c0_i32_1 = arith.constant 0 : i32
    return %c0_i32, %c0_i32_0 : i32, i32
  }
  func.func @transform_8(%arg0: i32) -> (i32, i32) {
    %c0_i32 = arith.constant 0 : i32
    %c0_i32_0 = arith.constant 0 : i32
    %c0_i32_1 = arith.constant 0 : i32
    return %c0_i32, %c0_i32_0 : i32, i32
  }
  func.func @transform_9(%arg0: i32) -> (i32, i32) {
    %c0_i32 = arith.constant 0 : i32
    %c0_i32_0 = arith.constant 0 : i32
    %c0_i32_1 = arith.constant 0 : i32
    return %c0_i32, %c0_i32_0 : i32, i32
  }
  func.func @transform_10(%arg0: i32) -> (i32, i32) {
    %c0_i32 = arith.constant 0 : i32
    %c0_i32_0 = arith.constant 0 : i32
    %c0_i32_1 = arith.constant 0 : i32
    return %c0_i32, %c0_i32_0 : i32, i32
  }
  func.func @transform_11(%arg0: i32) -> (i32, i32) {
    %c0_i32 = arith.constant 0 : i32
    %c0_i32_0 = arith.constant 0 : i32
    return %arg0, %c0_i32 : i32, i32
  }
}

</mosaic_0001>

<bundles_post_ra>
// kernel: dense_nn_forward.1
= control target key start
LH: loop header
LB: loop body
LE: loop exit
PB: predicated region body
PF: predicated region fallthrough
CT: control target
= control target key end

     0   :  { %s528_s0 = inlined_call_operand.vmem [shape: f32[8,32], index: 0, kind: input, shape index: {}]   ;;  %s529_s1 = inlined_call_operand.vmem [shape: f32[32,256], index: 1, kind: input, shape index: {}]   ;;  %s530_s2 = inlined_call_operand.vmem [shape: f32[1,256], index: 2, kind: input, shape index: {}]   ;;  %s531_s3 = inlined_call_operand.hbm [shape: f32[256,128], index: 3, kind: input, shape index: {}]   ;;  %s532_s4 = inlined_call_operand.vmem [shape: f32[1,128], index: 4, kind: input, shape index: {}]   ;;  %s533_s5 = inlined_call_operand.vmem [shape: f32[128,64], index: 5, kind: input, shape index: {}]   ;;  %s534_s6 = inlined_call_operand.vmem [shape: f32[1,64], index: 6, kind: input, shape index: {}]   ;;  %s535_s7 = inlined_call_operand.vmem [shape: f32[64,32], index: 7, kind: input, shape index: {}]   ;;  %s536_s8 = inlined_call_operand.vmem [shape: f32[1,32], index: 8, kind: input, shape index: {}]   ;;  %s537_s9 = inlined_call_operand.vmem [shape: f32[1,32], index: 9, kind: input, shape index: {}]   ;;  %s538_s10 = inlined_call_operand.<no memory space> [shape: f32[1,1], index: 10, kind: input, shape index: {}]   ;;  %s539_s11 = inlined_call_operand.vmem [shape: f32[8,1], index: 11, kind: output, shape index: {}]  }
   0x1   :  { %v16_v0 = vstv %s538_s10 }
   0x2   :  { %17 = vst [vmem:[#allocation2] sm:$0x1] %v16_v0 }
   0x3   :  { %18 = vsyncpa [#allocation4], 0  ;;  %s29_s21 = sshll.u32 %s531_s3, 4  ;;  %s339_s22 = smov [#allocation3]   ;;  %s30_s21 = int_to_ptr.hbm [resolvable:$true] %s29_s21 }
   0x4   :  { %s31_s23 = sshll.u32 %s339_s22, 4  ;;  %s340_s24 = smov 128   ;;  %s32_s23 = int_to_ptr.vmem [resolvable:$true] %s31_s23 }
   0x5   :  { %s341_s25 = smov 8  }
   0x6   :  { %37 = dma.hbm_to_vmem [thread:$0]  %s30_s21, 4096, %s32_s23, [#allocation4], %s340_s24, %s340_s24, %s341_s25  }
   0x7   :  { %337 = dma.done.wait [#allocation4], 4096  }
   0x8   :  { %338 = vsyncadd [#allocation4], 4294963200  ;;  %v63_v1 = vld [vmem:[%s529_s1 + $0x30] sm:$0xff]  ;;  %v61_v2 = vld [vmem:[%s529_s1 + $0x20] sm:$0xff]  ;;  %vm71_vm0 = vcmask 261120   ;;  %vm255_vm5 = vcmask 523264  }
   0x9   :  { %87 = vmatpush.msra.mxu1 %v63_v1  ;;  %v59_v3 = vld [vmem:[%s529_s1 + $0x10] sm:$0xff]  ;;  %v136_v4 = vld [vmem:[#allocation3 + $0x78] sm:$0xff]  ;;  %v133_v13 = vld [vmem:[#allocation3 + $0x60] sm:$0xff]  ;;  %vm295_vm7 = vcmask 7168  }
   0xa   :  { %v135_v5 = vld [vmem:[#allocation3 + $0x70] sm:$0xff]  ;;  %v57_v6 = vld [vmem:[%s529_s1] sm:$0xff]  ;;  %157 = vmatpush.msra.mxu2 %v136_v4  ;;  %v134_v9 = vld [vmem:[#allocation3 + $0x68] sm:$0xff] }
   0xb   :  { %88 = vmatpush.msra.mxu1 %v61_v2  ;;  %v152_v7 = vld [vmem:[#allocation3 + $0xf8] sm:$0xff]  ;;  %v151_v10 = vld [vmem:[#allocation3 + $0xf0] sm:$0xff]  ;;  %v150_v12 = vld [vmem:[#allocation3 + $0xe8] sm:$0xff] }
   0xc   :  { %v56_v8 = vld [vmem:[%s528_s0] sm:$0xff]  ;;  %177 = vmatpush.msra.mxu3 %v152_v7  ;;  %v64_v11 = vld [vmem:[%s529_s1 + $0x38] sm:$0xff]  ;;  %158 = vmatpush.msra.mxu2 %v135_v5  ;;  %v62_v14 = vld [vmem:[%s529_s1 + $0x28] sm:$0xff] }
   0xd   :  { %89 = vmatpush.msra.mxu1 %v59_v3  ;;  %v149_v15 = vld [vmem:[#allocation3 + $0xe0] sm:$0xff]  ;;  %v60_v16 = vld [vmem:[%s529_s1 + $0x18] sm:$0xff]  ;;  %v130_v22 = vld [vmem:[#allocation3 + $0x48] sm:$0xff] }
   0xe   :  { %178 = vmatpush.msra.mxu3 %v151_v10  ;;  %159 = vmatpush.msra.mxu2 %v134_v9  ;;  %v132_v17 = vld [vmem:[#allocation3 + $0x58] sm:$0xff]  ;;  %v58_v18 = vld [vmem:[%s529_s1 + $0x8] sm:$0xff]  ;;  %v131_v20 = vld [vmem:[#allocation3 + $0x50] sm:$0xff] }
   0xf   :  { %90 = vmatpush.msra.mxu1 %v57_v6  ;;  %v148_v19 = vld [vmem:[#allocation3 + $0xd8] sm:$0xff]  ;;  %v147_v21 = vld [vmem:[#allocation3 + $0xd0] sm:$0xff]  ;;  %v146_v23 = vld [vmem:[#allocation3 + $0xc8] sm:$0xff] }
  0x10   :  { %302 = vmatmul.msk.f32.vlgmr.msra.gmra.mxu1 %vm71_vm0, %v56_v8  ;;  %179 = vmatpush.msra.mxu3 %v150_v12  ;;  %v129_v24 = vld [vmem:[#allocation3 + $0x40] sm:$0xff]  ;;  %v128_v26 = vld [vmem:[#allocation3 + $0x38] sm:$0xff]  ;;  %v127_v28 = vld [vmem:[#allocation3 + $0x30] sm:$0xff] }
  0x11   :  { %107 = vmatpush.msrb.mxu1 %v64_v11  ;;  %160 = vmatpush.msra.mxu2 %v133_v13  ;;  %v145_v25 = vld [vmem:[#allocation3 + $0xc0] sm:$0xff]  ;;  %v144_v27 = vld [vmem:[#allocation3 + $0xb8] sm:$0xff]  ;;  %v126_v29 = vld [vmem:[#allocation3 + $0x28] sm:$0xff] }
  0x12   :  { %180 = vmatpush.msra.mxu3 %v149_v15  ;;  %v125_v30 = vld [vmem:[#allocation3 + $0x20] sm:$0xff]  ;;  %v124_v31 = vld [vmem:[#allocation3 + $0x18] sm:$0xff]  ;;  %v123_v32 = vld [vmem:[#allocation3 + $0x10] sm:$0xff] }
  0x13   :  { %108 = vmatpush.msrb.mxu1 %v62_v14  ;;  %161 = vmatpush.msra.mxu2 %v132_v17  ;;  %v143_v33 = vld [vmem:[#allocation3 + $0xb0] sm:$0xff]  ;;  %v122_v34 = vld [vmem:[#allocation3 + $0x8] sm:$0xff]  ;;  %v121_v36 = vld [vmem:[#allocation3] sm:$0xff] }
  0x14   :  { %181 = vmatpush.msra.mxu3 %v148_v19  ;;  %v142_v35 = vld [vmem:[#allocation3 + $0xa8] sm:$0xff]  ;;  %v141_v37 = vld [vmem:[#allocation3 + $0xa0] sm:$0xff]  ;;  %v140_v38 = vld [vmem:[#allocation3 + $0x98] sm:$0xff] }
  0x15   :  { %109 = vmatpush.msrb.mxu1 %v60_v16  ;;  %162 = vmatpush.msra.mxu2 %v131_v20  ;;  %v139_v39 = vld [vmem:[#allocation3 + $0x90] sm:$0xff]  ;;  %v138_v40 = vld [vmem:[#allocation3 + $0x88] sm:$0xff]  ;;  %v137_v41 = vld [vmem:[#allocation3 + $0x80] sm:$0xff] }
  0x16   :  { %182 = vmatpush.msra.mxu3 %v147_v21  ;;  %v215_v42 = vld [vmem:[%s533_s5 + $0x78] sm:$0xff]  ;;  %v214_v43 = vld [vmem:[%s533_s5 + $0x70] sm:$0xff]  ;;  %v213_v44 = vld [vmem:[%s533_s5 + $0x68] sm:$0xff] }
  0x17   :  { %110 = vmatpush.msrb.mxu1 %v58_v18  ;;  %163 = vmatpush.msra.mxu2 %v130_v22  ;;  %v212_v45 = vld [vmem:[%s533_s5 + $0x60] sm:$0xff]  ;;  %v211_v46 = vld [vmem:[%s533_s5 + $0x58] sm:$0xff]  ;;  %v210_v47 = vld [vmem:[%s533_s5 + $0x50] sm:$0xff] }
  0x18   :  { %303 = vmatmul.msk.f32.vlgmr.msrb.gmra.mxu1 %vm71_vm0, %v56_v8  ;;  %183 = vmatpush.msra.mxu3 %v146_v23  ;;  %v209_v48 = vld [vmem:[%s533_s5 + $0x48] sm:$0xff]  ;;  %v65_v49 = vld [vmem:[%s530_s2] sm:$0x3]  ;;  %v207_v51 = vld [vmem:[%s533_s5 + $0x38] sm:$0xff] }
  0x19   :  { %164 = vmatpush.msra.mxu2 %v129_v24  ;;  %220 = vmatpush.msra.mxu0 %v215_v42  ;;  %v208_v50 = vld [vmem:[%s533_s5 + $0x40] sm:$0xff]  ;;  %v67_v52 = vperm.slane %v65_v49, 0  ;;  %v68_v57 = vperm.slane %v65_v49, 1  ;;  %v206_v62 = vld [vmem:[%s533_s5 + $0x30] sm:$0xff]  ;;  %v205_v63 = vld [vmem:[%s533_s5 + $0x28] sm:$0xff] }
  0x1a   :  { %184 = vmatpush.msra.mxu3 %v145_v25  ;;  %v204_v0 = vld [vmem:[%s533_s5 + $0x20] sm:$0xff]  ;;  %v203_v1 = vld [vmem:[%s533_s5 + $0x18] sm:$0xff]  ;;  %v202_v2 = vld [vmem:[%s533_s5 + $0x10] sm:$0xff] }
  0x1b   :  { %165 = vmatpush.msra.mxu2 %v128_v26  ;;  %221 = vmatpush.msra.mxu0 %v214_v43  ;;  %v201_v3 = vld [vmem:[%s533_s5 + $0x8] sm:$0xff]  ;;  %v200_v4 = vld [vmem:[%s533_s5] sm:$0xff]  ;;  %v250_v5 = vld [vmem:[%s535_s7 + $0x38] sm:$0xff] }
  0x1c   :  { %185 = vmatpush.msra.mxu3 %v144_v27  ;;  %v249_v6 = vld [vmem:[%s535_s7 + $0x30] sm:$0xff]  ;;  %267 = vmatpush.msra.mxu1 %v250_v5  ;;  %v248_v7 = vld [vmem:[%s535_s7 + $0x28] sm:$0xff]  ;;  %v247_v8 = vld [vmem:[%s535_s7 + $0x20] sm:$0xff] }
  0x1d   :  { %166 = vmatpush.msra.mxu2 %v127_v28  ;;  %222 = vmatpush.msra.mxu0 %v213_v44  ;;  %v246_v9 = vld [vmem:[%s535_s7 + $0x18] sm:$0xff]  ;;  %v308_v10 = vld [vmem:[%s532_s4] ss:$0 sm:$0xff]  ;;  %v245_v17 = vld [vmem:[%s535_s7 + $0x10] sm:$0xff] }
  0x1e   :  { %186 = vmatpush.msra.mxu3 %v143_v33  ;;  %268 = vmatpush.msra.mxu1 %v249_v6  ;;  %v244_v18 = vld [vmem:[%s535_s7 + $0x8] sm:$0xff]  ;;  %v243_v19 = vld [vmem:[%s535_s7] sm:$0xff] }
  0x1f   :  { %167 = vmatpush.msra.mxu2 %v126_v29  ;;  %223 = vmatpush.msra.mxu0 %v212_v45  ;;  %v309_v20 = vld [vmem:[%s534_s6] ss:$0 sm:$0xff] }
  0x20   :  { %187 = vmatpush.msra.mxu3 %v142_v35  ;;  %269 = vmatpush.msra.mxu1 %v248_v7  ;;  %v310_v25 = vld [vmem:[%s536_s8] ss:$0 sm:$0xff] }
  0x21   :  { %168 = vmatpush.msra.mxu2 %v125_v30  ;;  %224 = vmatpush.msra.mxu0 %v211_v46  ;;  %v311_v28 = vld [vmem:[%s537_s9] ss:$0 sm:$0xff] }
  0x22   :  { %188 = vmatpush.msra.mxu3 %v141_v37  ;;  %270 = vmatpush.msra.mxu1 %v247_v8  ;;  %v312_v33 = vld [vmem:[#allocation2] ss:$0 sm:$0xff] }
  0x23   :  { %169 = vmatpush.msra.mxu2 %v124_v31  ;;  %225 = vmatpush.msra.mxu0 %v210_v47 }
  0x24   :  { %189 = vmatpush.msra.mxu3 %v140_v38  ;;  %271 = vmatpush.msra.mxu1 %v246_v9 }
  0x25   :  { %170 = vmatpush.msra.mxu2 %v123_v32  ;;  %226 = vmatpush.msra.mxu0 %v209_v48 }
  0x26   :  { %190 = vmatpush.msra.mxu3 %v139_v39  ;;  %272 = vmatpush.msra.mxu1 %v245_v17 }
  0x27   :  { %171 = vmatpush.msra.mxu2 %v122_v34  ;;  %227 = vmatpush.msra.mxu0 %v208_v50 }
  0x28   :  { %191 = vmatpush.msra.mxu3 %v138_v40  ;;  %273 = vmatpush.msra.mxu1 %v244_v18 }
  0x29   :  { %172 = vmatpush.msra.mxu2 %v121_v36  ;;  %228 = vmatpush.msra.mxu0 %v207_v51 }
  0x2a   :  { %192 = vmatpush.msra.mxu3 %v137_v41  ;;  %274 = vmatpush.msra.mxu1 %v243_v19 }
  0x2b   :  { %229 = vmatpush.msra.mxu0 %v206_v62 }
  0x2d   :  { %230 = vmatpush.msra.mxu0 %v205_v63 }
  0x2f   :  { %231 = vmatpush.msra.mxu0 %v204_v0 }
  0x31   :  { %232 = vmatpush.msra.mxu0 %v203_v1 }
  0x33   :  { %233 = vmatpush.msra.mxu0 %v202_v2 }
  0x35   :  { %234 = vmatpush.msra.mxu0 %v201_v3 }
  0x37   :  { %235 = vmatpush.msra.mxu0 %v200_v4 }
  0x8d   :  { %v92_v53 = vpop.f32.mrf.mxu1 }
  0x8e   :  { %v93_v54 = vadd.f32 %v92_v53, %v67_v52 }
  0x90   :  { %vm115_vm1 = vcmp.gt.f32.partialorder %v93_v54, 0.0  ;;  %v117_v55 = vmul.f32 0.01, %v93_v54 }
  0x92   :  { %v119_v56 = vsel %vm115_vm1, %v93_v54, %v117_v55 }
  0x93   :  { %173 = vmatmul.f32.vlgmr.msra.gmra.mxu2 %v119_v56 }
  0x95   :  { %v112_v58 = vpop.f32.mrf.mxu1 }
  0x96   :  { %v113_v59 = vadd.f32 %v112_v58, %v68_v57 }
  0x98   :  { %vm116_vm2 = vcmp.gt.f32.partialorder %v113_v59, 0.0  ;;  %v118_v60 = vmul.f32 0.01, %v113_v59 }
  0x9a   :  { %v120_v61 = vsel %vm116_vm2, %v113_v59, %v118_v60 }
  0x9b   :  { %193 = vmatmul.f32.vlgmr.msra.gmra.mxu3 %v120_v61 }
 0x116   :  { %v174_v11 = vpop.f32.mrf.mxu2 }
 0x117   :  { %v175_v12 = vadd.f32 %v308_v10, %v174_v11 }
 0x11e   :  { %v194_v13 = vpop.f32.mrf.mxu3 }
 0x11f   :  { %v195_v14 = vadd.f32 %v194_v13, %v175_v12 }
 0x121   :  { %vm197_vm3 = vcmp.gt.f32.partialorder %v195_v14, 0.0  ;;  %v198_v15 = vmul.f32 0.01, %v195_v14 }
 0x123   :  { %v199_v16 = vsel %vm197_vm3, %v195_v14, %v198_v15 }
 0x124   :  { %236 = vmatmul.f32.vlgmr.msra.gmra.mxu0 %v199_v16 }
 0x1a1   :  { %v237_v21 = vpop.f32.mrf.mxu0 }
 0x1a2   :  { %v238_v22 = vadd.f32 %v309_v20, %v237_v21 }
 0x1a4   :  { %vm240_vm4 = vcmp.gt.f32.partialorder %v238_v22, 0.0  ;;  %v241_v23 = vmul.f32 0.01, %v238_v22 }
 0x1a6   :  { %v242_v24 = vsel %vm240_vm4, %v238_v22, %v241_v23 }
 0x1a7   :  { %304 = vmatmul.msk.f32.vlgmr.msra.gmra.mxu1 %vm255_vm5, %v242_v24 }
 0x224   :  { %v276_v26 = vpop.f32.mrf.mxu1 }
 0x225   :  { %v277_v27 = vadd.f32 %v310_v25, %v276_v26 }
 0x227   :  { %v280_v29 = vmul.f32 0.01, %v277_v27  ;;  %vm279_vm6 = vcmp.gt.f32.partialorder %v277_v27, 0.0 }
 0x229   :  { %v281_v30 = vsel %vm279_vm6, %v277_v27, %v280_v29 }
 0x22a   :  { %v286_v31 = vmul.f32 %v311_v28, %v281_v30 }
 0x22c   :  { %v287_v32 = vsel %vm71_vm0, %v286_v31, 0.0 }
 0x22d   :  { %288 = vadd.xlane.f32.xlu0 %v287_v32 }
 0x2a0   :  { %v289_v34 = vpop.xlane.xlu0 %288 }
 0x2a1   :  { %v294_v35 = vadd.f32 %v312_v33, %v289_v34 }
 0x2a3   :  { %296 = vst.msk [vmem:[%s539_s11] sm:$0xff] %vm295_vm7, %v294_v35 }
 0x2a4   :  { %301 = vsyncpa [#allocation4], 1 }

</bundles_post_ra>
